<compile_context>
chip_gen: v6e
topology: v6e:2x2x1
jax: 0.10.0
libtpu: 0.0.40
codegen_flags: <defaults>
</compile_context>

<pallas_src>
import functools

import jax
import jax.numpy as jnp
from jax.experimental import pallas as pl
from jax.experimental.pallas import tpu as pltpu

IGNORE_INDEX = -100
_LANES = 128


def _lse_kernel(logits_ref, out_ref, m_sc, l_sc, *, vocab, v_tile, t_tile, ragged_v):
    v = pl.program_id(2)
    nv = pl.num_programs(2)

    # Reset the per-(batch, time-tile) online-logsumexp state at the first vocab block.
    @pl.when(v == 0)
    def _():
        m_sc[...] = jnp.full_like(m_sc, -jnp.inf)
        l_sc[...] = jnp.zeros_like(l_sc)

    x = logits_ref[0]                                    # (t_tile, v_tile), native dtype
    if ragged_v:
        # Folded-offset mask: loop-invariant local iota vs. a scalar bound.  Only the last
        # vocab block actually masks anything; this path is compiled only when V % v_tile != 0.
        remaining = vocab - v * v_tile
        col = jax.lax.broadcasted_iota(jnp.int32, (t_tile, v_tile), 1)
        xf = jnp.where(col < remaining, x.astype(jnp.float32), -jnp.inf)
        tile_max = jnp.max(xf, axis=-1, keepdims=True)
    else:
        # Full tile: no mask at all; tile max in the native dtype (bf16 VALU on v6e/v7x),
        # upcast only the exp/accumulate path to f32.
        tile_max = jnp.max(x, axis=-1, keepdims=True).astype(jnp.float32)
        xf = x.astype(jnp.float32)

    # --- online (flash-style) logsumexp update ---
    m_prev = m_sc[...]
    m_new = jnp.maximum(m_prev, tile_max)
    # Guard the rescale factor for all -inf rows (avoids -inf - -inf = NaN); O(t_tile) cost.
    alpha = jnp.where(m_new == -jnp.inf, 0.0, jnp.exp(m_prev - m_new))
    l_sc[...] = l_sc[...] * alpha + jnp.sum(jnp.exp(xf - m_new), axis=-1, keepdims=True)
    m_sc[...] = m_new

    # Last vocab block of this time tile: single store of the per-token logsumexp column.
    @pl.when(v == nv - 1)
    def _():
        out_ref[0] = m_sc[...] + jnp.log(l_sc[...])      # (t_tile, 1)


def _pick_tiles(seq_len, vocab):
    # Time tile: full S if small, else 128 (sublane-aligned).
    t_tile = seq_len if seq_len <= 128 else 128
    # ~8 MiB of f32 per logits tile (budgeted in f32 terms so the in-kernel upcast
    # temporaries are covered).  Double-buffered input + temps stay under ~48 MiB.
    budget_f32_bytes = 8 * 1024 * 1024
    v_target = max(_LANES, (budget_f32_bytes // (t_tile * 4)) // _LANES * _LANES)
    if vocab <= v_target:
        return t_tile, vocab
    # Prefer a lane-aligned v_tile that divides V so the ragged mask is compiled out,
    # but never shrink below half the target tile (per-step overhead would dominate).
    for cand in range(v_target, max(_LANES, v_target // 2) - 1, -_LANES):
        if vocab % cand == 0:
            return t_tile, cand
    return t_tile, v_target  # ragged last vocab block, masked in-kernel


def perplexity_forward(logits, labels, reduce=True, *, t_tile=None, v_tile=None):
    """logits: (B, S, V) float (f32 or bf16); labels: (B, S) int. Scalar if reduce else (B,)."""
    B, S, V = logits.shape

    # --- O(B*S) work hoisted out of the kernel -------------------------------------------
    # Time shift expressed purely on labels: position t is scored against labels[t+1];
    # the last position is ignored (matches logits[..., :-1, :] / labels[..., 1:]).
    shift_labels = jnp.concatenate(
        [labels[:, 1:].astype(jnp.int32),
         jnp.full((B, 1), IGNORE_INDEX, dtype=jnp.int32)],
        axis=1)                                                        # (B, S)
    valid = (shift_labels != IGNORE_INDEX)
    idx = jnp.clip(shift_labels, 0, V - 1)
    tgt = jnp.take_along_axis(logits, idx[..., None], axis=-1)[..., 0].astype(jnp.float32)

    # --- Pallas kernel: per-token logsumexp over V ---------------------------------------
    auto_t, auto_v = _pick_tiles(S, V)
    t_tile = auto_t if t_tile is None else t_tile
    v_tile = auto_v if v_tile is None else v_tile
    ragged_v = (V % v_tile) != 0
    grid = (B, pl.cdiv(S, t_tile), pl.cdiv(V, v_tile))

    kernel = functools.partial(_lse_kernel, vocab=V, v_tile=v_tile,
                               t_tile=t_tile, ragged_v=ragged_v)

    itemsize = jnp.dtype(logits.dtype).itemsize
    cost = pl.CostEstimate(
        flops=4 * B * S * V,
        transcendentals=B * S * V,
        bytes_accessed=B * S * V * itemsize + B * S * 4,
    )

    lse = pl.pallas_call(
        kernel,
        out_shape=jax.ShapeDtypeStruct((B, S, 1), jnp.float32),
        grid=grid,
        in_specs=[pl.BlockSpec((1, t_tile, v_tile), lambda b, t, v: (b, t, v))],
        out_specs=pl.BlockSpec((1, t_tile, 1), lambda b, t, v: (b, t, 0)),
        scratch_shapes=[
            pltpu.VMEM((t_tile, 1), jnp.float32),   # running row max
            pltpu.VMEM((t_tile, 1), jnp.float32),   # running sum-exp
        ],
        compiler_params=pltpu.CompilerParams(
            dimension_semantics=("parallel", "parallel", "arbitrary"),
            vmem_limit_bytes=48 * 1024 * 1024,
        ),
        cost_estimate=cost,
    )(logits)

    # --- O(B*S) epilogue ------------------------------------------------------------------
    lse = lse.reshape(B, S)
    validf = valid.astype(jnp.float32)
    nll = jnp.sum(validf * (lse - tgt), axis=-1)
    cnt = jnp.sum(validf, axis=-1)
    ppl = jnp.exp(nll / cnt)     # cnt == 0 -> inf/nan, same as the torch reference
    if reduce:
        return jnp.mean(ppl)
    return ppl


def _perplexity_ref(logits, labels, reduce=True):
    # Pure-JAX reference (matches torch CrossEntropyLoss per-sample + exp + mean).
    shift_logits = logits[:, :-1, :].astype(jnp.float32)
    shift_labels = labels[:, 1:].astype(jnp.int32)
    lse = jax.scipy.special.logsumexp(shift_logits, axis=-1)
    idx = jnp.maximum(shift_labels, 0)[..., None]
    tgt = jnp.take_along_axis(shift_logits, idx, axis=-1)[..., 0]
    valid = shift_labels != IGNORE_INDEX
    ce = (jnp.sum(jnp.where(valid, lse - tgt, 0.0), axis=-1)
          / jnp.sum(valid, axis=-1).astype(jnp.float32))
    ppl = jnp.exp(ce)
    return jnp.mean(ppl) if reduce else ppl


if __name__ == "__main__":
    key = jax.random.PRNGKey(0)
    k1, k2, k3, k4 = jax.random.split(key, 4)

    # Small shapes consistent with the module: batch=2, seq=8, vocab=32.
    B, S, V = 2, 8, 32
    logits = jax.random.normal(k1, (B, S, V), dtype=jnp.float32)
    labels = jax.random.randint(k2, (B, S), 0, V, dtype=jnp.int32)
    labels = labels.at[0, 3].set(IGNORE_INDEX)   # exercise ignore_index masking

    out = jax.block_until_ready(perplexity_forward(logits, labels, reduce=True))
    ref = _perplexity_ref(logits, labels, reduce=True)
    assert jnp.allclose(out, ref, rtol=1e-5, atol=1e-5), (out, ref)

    out_vec = jax.block_until_ready(perplexity_forward(logits, labels, reduce=False))
    ref_vec = _perplexity_ref(logits, labels, reduce=False)
    assert jnp.allclose(out_vec, ref_vec, rtol=1e-5, atol=1e-5), (out_vec, ref_vec)

    # Exercise the multi-tile, ragged-vocab and ragged-time paths with explicit small tiles.
    B2, S2, V2 = 2, 24, 200
    logits2 = jax.random.normal(k3, (B2, S2, V2), dtype=jnp.float32)
    labels2 = jax.random.randint(k4, (B2, S2), 0, V2, dtype=jnp.int32)
    labels2 = labels2.at[1, 5].set(IGNORE_INDEX)
    out2 = jax.block_until_ready(
        perplexity_forward(logits2, labels2, reduce=False, t_tile=16, v_tile=128))
    ref2 = _perplexity_ref(logits2, labels2, reduce=False)
    assert jnp.allclose(out2, ref2, rtol=1e-4, atol=1e-4), (out2, ref2)

    print("KERNEL_OK")
</pallas_src>

<mosaic_0001>
module attributes {stable_mosaic.version = 11 : i64} {
  func.func @_lse_kernel(%arg0: i32, %arg1: i32, %arg2: i32, %arg3: memref<1x8x32xf32, #tpu.memory_space<vmem>>, %arg4: memref<1x8x1xf32, #tpu.memory_space<vmem>>, %arg5: memref<8x1xf32, #tpu.memory_space<vmem>>, %arg6: memref<8x1xf32, #tpu.memory_space<vmem>>) attributes {dimension_semantics = [#tpu.dimension_semantics<parallel>, #tpu.dimension_semantics<parallel>, #tpu.dimension_semantics<arbitrary>], iteration_bounds = array<i64: 2, 1, 1>, scalar_prefetch = 0 : i64, scratch_operands = 2 : i64, tpu.core_type = #tpu.core_type<tc>, window_params = [{transform_indices = @transform_0, window_bounds = array<i64: 1, 8, 32>}, {transform_indices = @transform_1, window_bounds = array<i64: 1, 8, 1>}]} {
    %c0_i32 = arith.constant 0 : i32
    %0 = arith.cmpi eq, %arg2, %c0_i32 : i32
    %1 = arith.extui %0 : i1 to i32
    %c0_i32_0 = arith.constant 0 : i32
    %2 = arith.cmpi ne, %1, %c0_i32_0 : i32
    scf.if %2 {
      %cst_16 = arith.constant 0xFF800000 : f32
      %28 = vector.broadcast %cst_16 : f32 to vector<8x1xf32>
      %c0_17 = arith.constant 0 : index
      %c0_18 = arith.constant 0 : index
      %29 = vector.load %arg5[%c0_17, %c0_18] : memref<8x1xf32, #tpu.memory_space<vmem>>, vector<8x1xf32>
      tpu.vector_store %arg5[%c0_17, %c0_18], %28 {strides = array<i32>} : memref<8x1xf32, #tpu.memory_space<vmem>>, vector<8x1xf32>,
      %cst_19 = arith.constant 0.000000e+00 : f32
      %30 = vector.broadcast %cst_19 : f32 to vector<8x1xf32>
      %c0_20 = arith.constant 0 : index
      %c0_21 = arith.constant 0 : index
      %31 = vector.load %arg6[%c0_20, %c0_21] : memref<8x1xf32, #tpu.memory_space<vmem>>, vector<8x1xf32>
      tpu.vector_store %arg6[%c0_20, %c0_21], %30 {strides = array<i32>} : memref<8x1xf32, #tpu.memory_space<vmem>>, vector<8x1xf32>,
    } else {
    }
    %c0 = arith.constant 0 : index
    %c0_1 = arith.constant 0 : index
    %c0_2 = arith.constant 0 : index
    %3 = vector.load %arg3[%c0, %c0_1, %c0_2] : memref<1x8x32xf32, #tpu.memory_space<vmem>>, vector<1x8x32xf32>
    %4 = vector.shape_cast %3 : vector<1x8x32xf32> to vector<8x32xf32>
    %cst = arith.constant dense<0xFF800000> : vector<8xf32>
    %5 = vector.multi_reduction <maximumf>, %4, %cst [1] : vector<8x32xf32> to vector<8xf32>
    %6 = vector.shape_cast %5 : vector<8xf32> to vector<8x1xf32>
    %c0_3 = arith.constant 0 : index
    %c0_4 = arith.constant 0 : index
    %7 = vector.load %arg5[%c0_3, %c0_4] : memref<8x1xf32, #tpu.memory_space<vmem>>, vector<8x1xf32>
    %8 = arith.maximumf %7, %6 : vector<8x1xf32>
    %cst_5 = arith.constant 0xFF800000 : f32
    %9 = vector.broadcast %cst_5 : f32 to vector<8x1xf32>
    %10 = arith.cmpf oeq, %8, %9 : vector<8x1xf32>
    %11 = arith.subf %7, %8 : vector<8x1xf32>
    %12 = math.exp %11 : vector<8x1xf32>
    %cst_6 = arith.constant 0.000000e+00 : f32
    %13 = vector.broadcast %cst_6 : f32 to vector<8x1xf32>
    %14 = arith.select %10, %13, %12 : vector<8x1xi1>, vector<8x1xf32>
    %c0_7 = arith.constant 0 : index
    %c0_8 = arith.constant 0 : index
    %15 = vector.load %arg6[%c0_7, %c0_8] : memref<8x1xf32, #tpu.memory_space<vmem>>, vector<8x1xf32>
    %16 = arith.mulf %15, %14 : vector<8x1xf32>
    %17 = vector.broadcast %8 : vector<8x1xf32> to vector<8x32xf32>
    %18 = arith.subf %4, %17 : vector<8x32xf32>
    %19 = math.exp %18 : vector<8x32xf32>
    %cst_9 = arith.constant dense<0.000000e+00> : vector<8xf32>
    %20 = vector.multi_reduction <add>, %19, %cst_9 [1] : vector<8x32xf32> to vector<8xf32>
    %21 = vector.shape_cast %20 : vector<8xf32> to vector<8x1xf32>
    %22 = arith.addf %16, %21 : vector<8x1xf32>
    %c0_10 = arith.constant 0 : index
    %c0_11 = arith.constant 0 : index
    %23 = vector.load %arg6[%c0_10, %c0_11] : memref<8x1xf32, #tpu.memory_space<vmem>>, vector<8x1xf32>
    tpu.vector_store %arg6[%c0_10, %c0_11], %22 {strides = array<i32>} : memref<8x1xf32, #tpu.memory_space<vmem>>, vector<8x1xf32>,
    %c0_12 = arith.constant 0 : index
    %c0_13 = arith.constant 0 : index
    %24 = vector.load %arg5[%c0_12, %c0_13] : memref<8x1xf32, #tpu.memory_space<vmem>>, vector<8x1xf32>
    tpu.vector_store %arg5[%c0_12, %c0_13], %8 {strides = array<i32>} : memref<8x1xf32, #tpu.memory_space<vmem>>, vector<8x1xf32>,
    %c0_i32_14 = arith.constant 0 : i32
    %25 = arith.cmpi eq, %arg2, %c0_i32_14 : i32
    %26 = arith.extui %25 : i1 to i32
    %c0_i32_15 = arith.constant 0 : i32
    %27 = arith.cmpi ne, %26, %c0_i32_15 : i32
    scf.if %27 {
      %c0_16 = arith.constant 0 : index
      %c0_17 = arith.constant 0 : index
      %28 = vector.load %arg5[%c0_16, %c0_17] : memref<8x1xf32, #tpu.memory_space<vmem>>, vector<8x1xf32>
      %c0_18 = arith.constant 0 : index
      %c0_19 = arith.constant 0 : index
      %29 = vector.load %arg6[%c0_18, %c0_19] : memref<8x1xf32, #tpu.memory_space<vmem>>, vector<8x1xf32>
      %30 = math.log %29 : vector<8x1xf32>
      %31 = arith.addf %28, %30 : vector<8x1xf32>
      %c0_20 = arith.constant 0 : index
      %c0_21 = arith.constant 0 : index
      %c0_22 = arith.constant 0 : index
      %32 = vector.load %arg4[%c0_20, %c0_21, %c0_22] : memref<1x8x1xf32, #tpu.memory_space<vmem>>, vector<1x8x1xf32>
      %33 = vector.shape_cast %32 : vector<1x8x1xf32> to vector<8x1xf32>
      %34 = vector.shape_cast %31 : vector<8x1xf32> to vector<1x8x1xf32>
      tpu.vector_store %arg4[%c0_20, %c0_21, %c0_22], %34 {strides = array<i32>} : memref<1x8x1xf32, #tpu.memory_space<vmem>>, vector<1x8x1xf32>,
    } else {
    }
    return
  }
  func.func @transform_0(%arg0: i32, %arg1: i32, %arg2: i32) -> (i32, i32, i32) {
    %c0_i32 = arith.constant 0 : i32
    return %arg0, %arg1, %arg2 : i32, i32, i32
  }
  func.func @transform_1(%arg0: i32, %arg1: i32, %arg2: i32) -> (i32, i32, i32) {
    %c0_i32 = arith.constant 0 : i32
    %c0_i32_0 = arith.constant 0 : i32
    return %arg0, %arg1, %c0_i32 : i32, i32, i32
  }
}

</mosaic_0001>

<bundles_post_ra>
// kernel: tpu_custom_call.1
= control target key start
LH: loop header
LB: loop body
LE: loop exit
PB: predicated region body
PF: predicated region fallthrough
CT: control target
= control target key end

     0   :  { %6 = vsyncpa [#allocation5], 0  ;;  %s575_s0 = inlined_call_operand.hbm [shape: f32[2,8,32], index: 0, kind: input, shape index: {}]   ;;  %s576_s1 = inlined_call_operand.vmem [shape: f32[2,8,1], index: 1, kind: output, shape index: {}]  }
   0x1   :  { %8 = vsyncpa [#allocation5 + $0x1], 0  ;;  %s468_s6 = smov 0   ;;  %s470_s7 = smov 0  }
   0x2   :  { %s472_s8 = smov 0   ;;  %s474_s9 = smov 0  }
   0x3   :  { %s476_s10 = smov 0   ;;  %s478_s11 = smov 0  }
   0x4 LB: > { %s298_s12 = sadd.s32 4294967295, %s452_s11   ;;  %s33_s13 = sadd.s32 1, %s448_s10  ;;  %s452_s11 = sphi %s478_s11, %s14_s11   ;;  %s448_s10 = sphi %s476_s10, %s584_s10   ;;  %s444_s9 = sphi %s474_s9, %s583_s9   ;;  %s440_s8 = sphi %s472_s8, %s582_s8   ;;  %s436_s7 = sphi %s470_s7, %s581_s7   ;;  %s432_s6 = sphi %s468_s6, %s580_s6  }
   0x5   : > { %p35_p0 = scmp.ge.s32.totalorder %s33_s13, 2  ;;  %s44_s14 = sadd.s32 1, %s440_s8 }
   0x6   : > { %p51_p1 = scmp.ne.s32.totalorder %s440_s8, %s436_s7  ;;  %p52_p2 = scmp.eq.s32.totalorder %s452_s11, 0 }
   0x7   : > { %s586_s13 = smov (%p35_p0, %s33_s13), 0  ;;  %p57_p4 = scmp.ne.s32.totalorder %s436_s7, %s432_s6 }
   0x8   : > { %p504_p3 = por %p52_p2, %p51_p1  ;;  %s37_s16 = ssub.s32 %s448_s10, %s586_s13 }
   0x9   : > { %p58_p5 = scmp.eq.s32.totalorder %s298_s12, 0  ;;  %p42_p6 = scmp.eq.s32.totalorder %s37_s16, 0 }
   0xa   : > { %p315_p8 = scmp.lt.s32.totalorder %s452_s11, 2  ;;  %s109_s19 = sand.u32 1, %s440_s8  }
   0xb   : > { %p511_p7 = por %p58_p5, %p57_p4  ;;  %s303_s20 = sshll.u32 %s448_s10, 7 }
   0xc   : > { %s517_s18 = scalar_select %p42_p6, %s440_s8, %s44_s14  }
   0xd   : > { %s302_s21 = sshll.u32 %s109_s19, 3  ;;  %s120_s24 = scalar_lea.hbm %s575_s0, %s303_s20 }
   0xe   : > { %s113_s25 = scalar_lea.vmem [#allocation4], %s302_s21  ;;  %p526_p9 = pnand %p315_p8, %p504_p3 }
   0xf   : > { %s122_s26 = sshll.u32 %s113_s25, 4  ;;  %p304_p10 = scmp.ge.s32.totalorder %s452_s11, 1  ;;  %s123_s26 = int_to_ptr.vmem [resolvable:$true] %s122_s26 }
  0x10   : > { %p127_p11 = scmp.lt.s32.totalorder %s452_s11, 3  ;;  %s110_s28 = scalar_lea.sflag [#allocation5], %s109_s19 }
  0x11   : > { %p376_p12 = pneg %p526_p9  ;;  %s387_s29 = scalar_lea.vmem %s123_s26, 128 }
  0x12   : > { %p388_p13 = scmp.ne.s32.totalorder %s123_s26, %s387_s29  ;;  %s454_s30 = smov [#allocation4]  }
  0x13   : > { %s392_s2 = sshll.u32 %s454_s30, 4  ;;  %s393_s2 = int_to_ptr.vmem [resolvable:$false] %s392_s2 }
  0x14   : > { %p390_p0 = pnand %p388_p13, %p376_p12  ;;  %s394_s3 = scalar_lea.vmem %s393_s2, 256 }
  0x15   : > { %p395_p2 = scmp.lt.s32.totalorder %s123_s26, %s393_s2  ;;  %p396_p3 = scmp.lt.s32.totalorder %s394_s3, %s387_s29 }
  0x16   : > { %p391_p1 = pneg %p390_p0 }
  0x17   : > { %p397_p4 = por %p396_p3, %p395_p2 }
  0x19   : > { %p398_p5 = pnand %p397_p4, %p391_p1 }
  0x1b   : > { %401 = shalt.err (!%p398_p5)
}
  0x1c   : > { %314 = dma.hbm_to_vmem [thread:$0]  (!%p526_p9), %s120_s24, 128, %s123_s26, %s110_s28  }
  0x1d   : > { %p128_p6 = pnand %p304_p10, %p127_p11 }
  0x1e   : > { %s133_s4 = sand.u32 (!%p128_p6), 1, %s436_s7  }
  0x1f   : > { %131 = sbr.rel (%p128_p6) target bundleno = 489 (0x1e9), region = 24  ;;  %s305_s5 = sshll.u32 (!%p128_p6), %s133_s4, 3 }
  0x20   : > { %s134_s6 = scalar_lea.sflag (!%p128_p6), [#allocation5], %s133_s4  ;;  %s137_s12 = scalar_lea.vmem (!%p128_p6), [#allocation4], %s305_s5 }
  0x24   : > { %427 = dma.done.wait (%p511_p7), %s134_s6, 128  }
  0x25   : > { %429 = vsyncadd (%p511_p7), %s134_s6, 4294967168  ;;  %vm169_vm0 = vcmask 7168   ;;  %v455_v0 = vmov -inf   ;;  %vm173_vm1 = vcmask 261120   ;;  %v172_v1 = vld [vmem:[%s137_s12] sm:$0xff]  ;;  %v456_v3 = vmov 0  }
  0x26   : > { %170 = vst.msk [vmem:[#allocation2] sm:$0xff] %vm169_vm0, %v455_v0  ;;  %v174_v2 = vsel %vm173_vm1, %v172_v1, -inf  ;;  %367 = vset.pattern.permute.xlu0 %v456_v3  ;;  %v457_v4 = vmov 0.0   ;;  %p158_p7 = scmp.lt.s32.totalorder %s444_s9, 1 }
  0x27   : > { %175 = vmax.xlane.f32.xlu0 %v174_v2  ;;  %171 = vst.msk [vmem:[#allocation3] sm:$0xff] %vm169_vm0, %v457_v4 }
  0x28   : > { %s588_s9 = smov (!%p158_p7, %s444_s9), 1 }
  0x29   : > { %s306_s14 = sshll.u32 %s588_s9, 3 }
  0x2a   : > { %s164_s17 = scalar_lea.vmem %s576_s1, %s306_s14 }
  0x2d   : > { %v177_v5 = vld [vmem:[#allocation2] sm:$0xff] }
  0x2e   : > { %v184_v17 = vld [vmem:[#allocation3] sm:$0xff] }
  0xb0   : > { %v176_v6 = vpop.xlane.xlu0 %175 }
  0xb1   : > { %v178_v7 = vmax.f32 %v177_v5, %v176_v6 }
  0xb3   : > { %v180_v8 = vsub.f32 %v177_v5, %v178_v7  ;;  %200 = vst.msk [vmem:[#allocation2] sm:$0xff] %vm169_vm0, %v178_v7  ;;  %188 = vperm.xlu0 %367, %v178_v7   ;;  %vm179_vm2 = vcmp.eq.f32.partialorder %v178_v7, -inf }
  0xb5   : > { %v181_v9 = vmul.f32 1.442695, %v180_v8 }
  0xb7   : > { %368 = vpow2.f32 %v181_v9 }
  0xba   : > { %v204_v24 = vld [vmem:[#allocation2] sm:$0xff] }
  0xc4   : > { %v369_v10 = vpop.eup %368 }
  0xc5   : > { %v183_v11 = vsel %vm179_vm2, 0.0, %v369_v10 }
  0xc6   : > { %v185_v18 = vmul.f32 %v184_v17, %v183_v11 }
 0x12e   : > { %v189_v12 = vpop.permute.xlu0 %188 }
 0x12f   : > { %v191_v13 = vsub.f32 %v172_v1, %v189_v12 }
 0x131   : > { %v192_v14 = vmul.f32 1.442695, %v191_v13 }
 0x133   : > { %370 = vpow2.f32 %v192_v14 }
 0x140   : > { %v371_v15 = vpop.eup %370 }
 0x141   : > { %v194_v16 = vsel %vm173_vm1, %v371_v15, 0.0 }
 0x142   : > { %195 = vadd.xlane.f32.xlu1 %v194_v16 }
 0x1cb   : > { %v196_v19 = vpop.xlane.xlu1 %195 }
 0x1cc   : > { %v197_v20 = vadd.f32 %v196_v19, %v185_v18 }
 0x1ce   : > { %199 = vst.msk [vmem:[#allocation3] sm:$0xff] %vm169_vm0, %v197_v20 }
 0x1d5   : > { %v205_v21 = vld [vmem:[#allocation3] sm:$0xff] }
 0x1d6   : > { %372 = vlog2.f32 %v205_v21 }
 0x1e3   : > { %v373_v22 = vpop.eup %372 }
 0x1e4   : > { %v207_v23 = vmul.f32 0.6931472, %v373_v22 }
 0x1e6   : > { %v208_v25 = vadd.f32 %v207_v23, %v204_v24 }
 0x1e8   : > { %209 = vst.msk [vmem:[%s164_s17] sm:$0xff] %vm169_vm0, %v208_v25 }
 0x1e9 PF: > { %s14_s11 = sadd.s32 1, %s452_s11   ;;  %s580_s6 = smov %s436_s7 }
 0x1ea   : > { %p11_p8 = scmp.ge.s32.totalorder %s14_s11, 4   ;;  %s581_s7 = smov %s440_s8 }
 0x1eb   : > { %s582_s8 = smov %s517_s18  ;;  %s583_s9 = smov %s448_s10 }
 0x1ec   : > { %s584_s10 = smov %s586_s13  ;;  %13 = sbr.rel (!%p11_p8) target bundleno = 4 (0x4), region = 72 }
 0x1f1   :  { %235 = vsyncpa [#allocation5], 1 }
 0x1f2   :  { %237 = vsyncpa [#allocation5 + $0x1], 1 }

</bundles_post_ra>
